<compile_context>
chip_gen: v7x
topology: tpu7x:2x2x1
jax: 0.10.0
libtpu: 0.0.40
codegen_flags: <defaults>
</compile_context>

<pallas_src>
import functools

import jax
import jax.numpy as jnp
from jax.experimental import pallas as pl
from jax.experimental.pallas import tpu as pltpu

HID_DIM = 32
N_HEADS = 4
HEAD_DIM = HID_DIM // N_HEADS
DROPOUT = 0.1  # unused at inference


def _mha_kernel(x_ref, wqkv_ref, bqkv_ref, wo_ref, bo_ref, out_ref, attn_ref, *,
                approx_recip: bool):
    S = x_ref.shape[1]
    three_h = x_ref.shape[2]

    # Replicate the (1, S, 3H) input across the head axis so every stage below is a single
    # leading-batch dot_general (no per-head Python loop, no lane shuffles).
    x = jnp.broadcast_to(x_ref[...], (N_HEADS, S, three_h))

    # Fused block-diagonal Q/K/V projection, all heads at once:
    #   (nH, S, 3H) @ (nH, 3H, 3hd) -> (nH, S, 3hd) == [Qh | Kh | Vh] per head.
    qkv = jnp.einsum("hsi,hio->hso", x, wqkv_ref[...],
                     preferred_element_type=jnp.float32) + bqkv_ref[...]
    q = qkv[:, :, 0:HEAD_DIM]                       # (nH, S, hd)
    k = qkv[:, :, HEAD_DIM:2 * HEAD_DIM]            # (nH, S, hd)
    v = qkv[:, :, 2 * HEAD_DIM:3 * HEAD_DIM]        # (nH, S, hd)

    # Scaled dot-product attention, batched over heads.  Contracting the last dim of both
    # operands avoids materializing K^T.
    inv_scale = 1.0 / float(HEAD_DIM) ** 0.5        # compile-time constant
    energy = jnp.einsum("hqd,hkd->hqk", q, k,
                        preferred_element_type=jnp.float32) * inv_scale

    # Numerically stable softmax over the key axis.
    e_max = jnp.max(energy, axis=-1, keepdims=True)
    p = jnp.exp(energy - e_max)
    denom = jnp.sum(p, axis=-1, keepdims=True)
    if approx_recip:
        attn = p * pl.reciprocal(denom, approx=True)   # EUP slot (approximate)
    else:
        attn = p / denom
    attn_ref[0] = attn                               # (nH, S, S)
    # TODO(synk): attention dropout omitted (eval-mode identity) and mask=None path only.

    ctx = jnp.einsum("hqk,hkd->hqd", attn, v, preferred_element_type=jnp.float32)

    # Output projection without the lane-axis concatenate:
    #   concat_h(ctx_h) @ Wo == sum_h ctx_h @ Wo[h*hd:(h+1)*hd, :]
    out = jnp.einsum("hqd,hdo->hqo", ctx, wo_ref[...],
                     preferred_element_type=jnp.float32)
    out_ref[0] = jnp.sum(out, axis=0) + bo_ref[...]


def review_multi_head_attention_pallas(query, key, value, params, *, approx_recip=False):
    """query/key/value: [B, S, H] float32. Returns (x [B,S,H], attention [B,nH,S,S])."""
    B, S, H = query.shape
    assert H == HID_DIM
    hd = HEAD_DIM

    wq, bq, wk, bk, wv, bv, wo, bo = params

    # --- Wrapper-side parameter packing (layout plumbing, not compute hoisting) ---
    # Head-major per-projection weights: (nH, H, hd).
    wq_h = wq.reshape(H, N_HEADS, hd).transpose(1, 0, 2)
    wk_h = wk.reshape(H, N_HEADS, hd).transpose(1, 0, 2)
    wv_h = wv.reshape(H, N_HEADS, hd).transpose(1, 0, 2)
    z = jnp.zeros_like(wq_h)
    # Block-diagonal fused QKV weight, head-major: (nH, 3H, 3hd).
    # Row blocks pick [query | key | value] out of the concatenated input, column blocks
    # emit [Qh | Kh | Vh]; the zero blocks contribute exact zeros (cross-attention safe).
    w_qkv = jnp.concatenate([
        jnp.concatenate([wq_h, z, z], axis=2),
        jnp.concatenate([z, wk_h, z], axis=2),
        jnp.concatenate([z, z, wv_h], axis=2),
    ], axis=1)
    b_qkv = jnp.concatenate(
        [bq.reshape(N_HEADS, hd), bk.reshape(N_HEADS, hd), bv.reshape(N_HEADS, hd)],
        axis=1)[:, None, :]                        # (nH, 1, 3hd)
    wo_h = wo.reshape(N_HEADS, hd, H)              # (nH, hd, H)

    # Concatenated inputs: (B, S, 3H) = [query | key | value].
    xcat = jnp.concatenate([query, key, value], axis=-1)

    out_shapes = (
        jax.ShapeDtypeStruct((B, S, H), jnp.float32),
        jax.ShapeDtypeStruct((B, N_HEADS, S, S), jnp.float32),
    )

    grid_spec = pltpu.PrefetchScalarGridSpec(
        num_scalar_prefetch=0,
        grid=(B,),
        in_specs=[
            pl.BlockSpec((1, S, 3 * H), lambda b: (b, 0, 0)),
            pl.BlockSpec((N_HEADS, 3 * H, 3 * hd), lambda b: (0, 0, 0)),
            pl.BlockSpec((N_HEADS, 1, 3 * hd), lambda b: (0, 0, 0)),
            pl.BlockSpec((N_HEADS, hd, H), lambda b: (0, 0, 0)),
            pl.BlockSpec((1, H), lambda b: (0, 0)),
        ],
        out_specs=[
            pl.BlockSpec((1, S, H), lambda b: (b, 0, 0)),
            pl.BlockSpec((1, N_HEADS, S, S), lambda b: (b, 0, 0, 0)),
        ],
    )

    kernel = functools.partial(_mha_kernel, approx_recip=approx_recip)
    return pl.pallas_call(
        kernel,
        out_shape=out_shapes,
        grid_spec=grid_spec,
        compiler_params=pltpu.CompilerParams(dimension_semantics=("parallel",)),
    )(xcat, w_qkv, b_qkv, wo_h, bo)


def _reference(query, key, value, params):
    """Pure-JAX reference mirroring the PyTorch forward."""
    wq, bq, wk, bk, wv, bv, wo, bo = params
    B, S, H = query.shape
    Q = query @ wq + bq
    K = key @ wk + bk
    V = value @ wv + bv
    Q = Q.reshape(B, S, N_HEADS, HEAD_DIM).transpose(0, 2, 1, 3)
    K = K.reshape(B, S, N_HEADS, HEAD_DIM).transpose(0, 2, 1, 3)
    V = V.reshape(B, S, N_HEADS, HEAD_DIM).transpose(0, 2, 1, 3)
    energy = jnp.einsum('bhqd,bhkd->bhqk', Q, K) / jnp.sqrt(jnp.float32(HEAD_DIM))
    attention = jax.nn.softmax(energy, axis=-1)
    x = jnp.einsum('bhqk,bhkd->bhqd', attention, V)
    x = x.transpose(0, 2, 1, 3).reshape(B, S, H)
    x = x @ wo + bo
    return x, attention


if __name__ == "__main__":
    B, S, H = 2, 8, HID_DIM

    key0 = jax.random.PRNGKey(0)
    ks = jax.random.split(key0, 11)

    query = jax.random.normal(ks[0], (B, S, H), dtype=jnp.float32)
    key_in = jax.random.normal(ks[1], (B, S, H), dtype=jnp.float32)
    value = jax.random.normal(ks[2], (B, S, H), dtype=jnp.float32)

    init_scale = 1.0 / jnp.sqrt(jnp.float32(H))
    params = (
        jax.random.normal(ks[3], (H, H), dtype=jnp.float32) * init_scale,   # wq
        jax.random.normal(ks[4], (1, H), dtype=jnp.float32) * init_scale,   # bq
        jax.random.normal(ks[5], (H, H), dtype=jnp.float32) * init_scale,   # wk
        jax.random.normal(ks[6], (1, H), dtype=jnp.float32) * init_scale,   # bk
        jax.random.normal(ks[7], (H, H), dtype=jnp.float32) * init_scale,   # wv
        jax.random.normal(ks[8], (1, H), dtype=jnp.float32) * init_scale,   # bv
        jax.random.normal(ks[9], (H, H), dtype=jnp.float32) * init_scale,   # wo
        jax.random.normal(ks[10], (1, H), dtype=jnp.float32) * init_scale,  # bo
    )

    out, attn = review_multi_head_attention_pallas(query, key_in, value, params,
                                                   approx_recip=False)
    out = jax.block_until_ready(out)
    attn = jax.block_until_ready(attn)

    out_ref, attn_ref = _reference(query, key_in, value, params)
    assert jnp.allclose(out, out_ref, atol=1e-4, rtol=1e-4), "output mismatch"
    assert jnp.allclose(attn, attn_ref, atol=1e-5, rtol=1e-5), "attention mismatch"

    print("KERNEL_OK")
</pallas_src>

<mosaic_0001>
module attributes {stable_mosaic.version = 11 : i64} {
  func.func @_mha_kernel(%arg0: i32, %arg1: memref<1x8x96xf32, #tpu.memory_space<vmem>>, %arg2: memref<4x96x24xf32, #tpu.memory_space<vmem>>, %arg3: memref<4x1x24xf32, #tpu.memory_space<vmem>>, %arg4: memref<4x8x32xf32, #tpu.memory_space<vmem>>, %arg5: memref<1x32xf32, #tpu.memory_space<vmem>>, %arg6: memref<1x8x32xf32, #tpu.memory_space<vmem>>, %arg7: memref<1x4x8x8xf32, #tpu.memory_space<vmem>>) attributes {dimension_semantics = [#tpu.dimension_semantics<parallel>], iteration_bounds = array<i64: 2>, scalar_prefetch = 0 : i64, scratch_operands = 0 : i64, tpu.core_type = #tpu.core_type<tc>, window_params = [{transform_indices = @transform_0, window_bounds = array<i64: 1, 8, 96>}, {pipeline_mode = #tpu.pipeline_mode<synchronous>, transform_indices = @transform_1, window_bounds = array<i64: 4, 96, 24>}, {pipeline_mode = #tpu.pipeline_mode<synchronous>, transform_indices = @transform_2, window_bounds = array<i64: 4, 1, 24>}, {pipeline_mode = #tpu.pipeline_mode<synchronous>, transform_indices = @transform_3, window_bounds = array<i64: 4, 8, 32>}, {pipeline_mode = #tpu.pipeline_mode<synchronous>, transform_indices = @transform_4, window_bounds = array<i64: 1, 32>}, {transform_indices = @transform_5, window_bounds = array<i64: 1, 8, 32>}, {transform_indices = @transform_6, window_bounds = array<i64: 1, 4, 8, 8>}]} {
    %c0 = arith.constant 0 : index
    %c0_0 = arith.constant 0 : index
    %c0_1 = arith.constant 0 : index
    %0 = vector.load %arg1[%c0, %c0_0, %c0_1] : memref<1x8x96xf32, #tpu.memory_space<vmem>>, vector<1x8x96xf32>
    %1 = vector.shape_cast %0 : vector<1x8x96xf32> to vector<1x8x96xf32>
    %2 = vector.broadcast %1 : vector<1x8x96xf32> to vector<4x8x96xf32>
    %c0_2 = arith.constant 0 : index
    %c0_3 = arith.constant 0 : index
    %c0_4 = arith.constant 0 : index
    %3 = vector.load %arg2[%c0_2, %c0_3, %c0_4] : memref<4x96x24xf32, #tpu.memory_space<vmem>>, vector<4x96x24xf32>
    "tpu.trace_start"() <{level = 10 : i32, message = "hsi,hio->hso"}> : () -> ()
    %cst = arith.constant dense<0.000000e+00> : vector<4x8x24xf32>
    %4 = tpu.matmul %2, %3, %cst {dimension_numbers = #tpu.dot_dimension_numbers<[2], [1], [1], [2], [0, 0, 0, 1, 1, 2], [0], [0]>} : vector<4x8x96xf32>, vector<4x96x24xf32>, vector<4x8x24xf32> -> vector<4x8x24xf32>
    "tpu.trace_stop"() : () -> ()
    %c0_5 = arith.constant 0 : index
    %c0_6 = arith.constant 0 : index
    %c0_7 = arith.constant 0 : index
    %5 = vector.load %arg3[%c0_5, %c0_6, %c0_7] : memref<4x1x24xf32, #tpu.memory_space<vmem>>, vector<4x1x24xf32>
    %6 = vector.broadcast %5 : vector<4x1x24xf32> to vector<4x8x24xf32>
    %7 = arith.addf %4, %6 : vector<4x8x24xf32>
    %8 = vector.extract_strided_slice %7 {offsets = [0, 0, 0], sizes = [4, 8, 8], strides = [1, 1, 1]} : vector<4x8x24xf32> to vector<4x8x8xf32>
    %9 = vector.extract_strided_slice %7 {offsets = [0, 0, 8], sizes = [4, 8, 8], strides = [1, 1, 1]} : vector<4x8x24xf32> to vector<4x8x8xf32>
    %10 = vector.extract_strided_slice %7 {offsets = [0, 0, 16], sizes = [4, 8, 8], strides = [1, 1, 1]} : vector<4x8x24xf32> to vector<4x8x8xf32>
    "tpu.trace_start"() <{level = 10 : i32, message = "hqd,hkd->hqk"}> : () -> ()
    %cst_8 = arith.constant dense<0.000000e+00> : vector<4x8x8xf32>
    %11 = tpu.matmul %8, %9, %cst_8 {dimension_numbers = #tpu.dot_dimension_numbers<[2], [2], [1], [1], [0, 0, 0, 1, 1, 1], [0], [0]>} : vector<4x8x8xf32>, vector<4x8x8xf32>, vector<4x8x8xf32> -> vector<4x8x8xf32>
    "tpu.trace_stop"() : () -> ()
    %cst_9 = arith.constant 0.353553385 : f32
    %12 = vector.broadcast %cst_9 : f32 to vector<4x8x8xf32>
    %13 = arith.mulf %11, %12 : vector<4x8x8xf32>
    %cst_10 = arith.constant dense<0xFF800000> : vector<4x8xf32>
    %14 = vector.multi_reduction <maximumf>, %13, %cst_10 [2] : vector<4x8x8xf32> to vector<4x8xf32>
    %15 = vector.shape_cast %14 : vector<4x8xf32> to vector<4x8x1xf32>
    %16 = vector.broadcast %15 : vector<4x8x1xf32> to vector<4x8x8xf32>
    %17 = arith.subf %13, %16 : vector<4x8x8xf32>
    %18 = math.exp %17 : vector<4x8x8xf32>
    %cst_11 = arith.constant dense<0.000000e+00> : vector<4x8xf32>
    %19 = vector.multi_reduction <add>, %18, %cst_11 [2] : vector<4x8x8xf32> to vector<4x8xf32>
    %20 = vector.shape_cast %19 : vector<4x8xf32> to vector<4x8x1xf32>
    %21 = vector.broadcast %20 : vector<4x8x1xf32> to vector<4x8x8xf32>
    %22 = arith.divf %18, %21 : vector<4x8x8xf32>
    %c0_12 = arith.constant 0 : index
    %c0_13 = arith.constant 0 : index
    %c0_14 = arith.constant 0 : index
    %c0_15 = arith.constant 0 : index
    %23 = vector.load %arg7[%c0_12, %c0_13, %c0_14, %c0_15] : memref<1x4x8x8xf32, #tpu.memory_space<vmem>>, vector<1x4x8x8xf32>
    %24 = vector.shape_cast %23 : vector<1x4x8x8xf32> to vector<4x8x8xf32>
    %25 = vector.shape_cast %22 : vector<4x8x8xf32> to vector<1x4x8x8xf32>
    tpu.vector_store %arg7[%c0_12, %c0_13, %c0_14, %c0_15], %25 {strides = array<i32>} : memref<1x4x8x8xf32, #tpu.memory_space<vmem>>, vector<1x4x8x8xf32>,
    "tpu.trace_start"() <{level = 10 : i32, message = "hqk,hkd->hqd"}> : () -> ()
    %cst_16 = arith.constant dense<0.000000e+00> : vector<4x8x8xf32>
    %26 = tpu.matmul %22, %10, %cst_16 {dimension_numbers = #tpu.dot_dimension_numbers<[2], [1], [1], [2], [0, 0, 0, 1, 1, 2], [0], [0]>} : vector<4x8x8xf32>, vector<4x8x8xf32>, vector<4x8x8xf32> -> vector<4x8x8xf32>
    "tpu.trace_stop"() : () -> ()
    %c0_17 = arith.constant 0 : index
    %c0_18 = arith.constant 0 : index
    %c0_19 = arith.constant 0 : index
    %27 = vector.load %arg4[%c0_17, %c0_18, %c0_19] : memref<4x8x32xf32, #tpu.memory_space<vmem>>, vector<4x8x32xf32>
    "tpu.trace_start"() <{level = 10 : i32, message = "hqd,hdo->hqo"}> : () -> ()
    %cst_20 = arith.constant dense<0.000000e+00> : vector<4x8x32xf32>
    %28 = tpu.matmul %26, %27, %cst_20 {dimension_numbers = #tpu.dot_dimension_numbers<[2], [1], [1], [2], [0, 0, 0, 1, 1, 2], [0], [0]>} : vector<4x8x8xf32>, vector<4x8x32xf32>, vector<4x8x32xf32> -> vector<4x8x32xf32>
    "tpu.trace_stop"() : () -> ()
    %cst_21 = arith.constant dense<0.000000e+00> : vector<8x32xf32>
    %29 = vector.multi_reduction <add>, %28, %cst_21 [0] : vector<4x8x32xf32> to vector<8x32xf32>
    %c0_22 = arith.constant 0 : index
    %c0_23 = arith.constant 0 : index
    %30 = vector.load %arg5[%c0_22, %c0_23] : memref<1x32xf32, #tpu.memory_space<vmem>>, vector<1x32xf32>
    %31 = vector.broadcast %30 : vector<1x32xf32> to vector<8x32xf32>
    %32 = arith.addf %29, %31 : vector<8x32xf32>
    %c0_24 = arith.constant 0 : index
    %c0_25 = arith.constant 0 : index
    %c0_26 = arith.constant 0 : index
    %33 = vector.load %arg6[%c0_24, %c0_25, %c0_26] : memref<1x8x32xf32, #tpu.memory_space<vmem>>, vector<1x8x32xf32>
    %34 = vector.shape_cast %33 : vector<1x8x32xf32> to vector<8x32xf32>
    %35 = vector.shape_cast %32 : vector<8x32xf32> to vector<1x8x32xf32>
    tpu.vector_store %arg6[%c0_24, %c0_25, %c0_26], %35 {strides = array<i32>} : memref<1x8x32xf32, #tpu.memory_space<vmem>>, vector<1x8x32xf32>,
    return
  }
  func.func @transform_0(%arg0: i32) -> (i32, i32, i32) {
    %c0_i32 = arith.constant 0 : i32
    %c0_i32_0 = arith.constant 0 : i32
    %c0_i32_1 = arith.constant 0 : i32
    return %arg0, %c0_i32, %c0_i32_0 : i32, i32, i32
  }
  func.func @transform_1(%arg0: i32) -> (i32, i32, i32) {
    %c0_i32 = arith.constant 0 : i32
    %c0_i32_0 = arith.constant 0 : i32
    %c0_i32_1 = arith.constant 0 : i32
    %c0_i32_2 = arith.constant 0 : i32
    return %c0_i32, %c0_i32_0, %c0_i32_1 : i32, i32, i32
  }
  func.func @transform_2(%arg0: i32) -> (i32, i32, i32) {
    %c0_i32 = arith.constant 0 : i32
    %c0_i32_0 = arith.constant 0 : i32
    %c0_i32_1 = arith.constant 0 : i32
    %c0_i32_2 = arith.constant 0 : i32
    return %c0_i32, %c0_i32_0, %c0_i32_1 : i32, i32, i32
  }
  func.func @transform_3(%arg0: i32) -> (i32, i32, i32) {
    %c0_i32 = arith.constant 0 : i32
    %c0_i32_0 = arith.constant 0 : i32
    %c0_i32_1 = arith.constant 0 : i32
    %c0_i32_2 = arith.constant 0 : i32
    return %c0_i32, %c0_i32_0, %c0_i32_1 : i32, i32, i32
  }
  func.func @transform_4(%arg0: i32) -> (i32, i32) {
    %c0_i32 = arith.constant 0 : i32
    %c0_i32_0 = arith.constant 0 : i32
    %c0_i32_1 = arith.constant 0 : i32
    return %c0_i32, %c0_i32_0 : i32, i32
  }
  func.func @transform_5(%arg0: i32) -> (i32, i32, i32) {
    %c0_i32 = arith.constant 0 : i32
    %c0_i32_0 = arith.constant 0 : i32
    %c0_i32_1 = arith.constant 0 : i32
    return %arg0, %c0_i32, %c0_i32_0 : i32, i32, i32
  }
  func.func @transform_6(%arg0: i32) -> (i32, i32, i32, i32) {
    %c0_i32 = arith.constant 0 : i32
    %c0_i32_0 = arith.constant 0 : i32
    %c0_i32_1 = arith.constant 0 : i32
    %c0_i32_2 = arith.constant 0 : i32
    return %arg0, %c0_i32, %c0_i32_0, %c0_i32_1 : i32, i32, i32, i32
  }
}

</mosaic_0001>

<bundles_post_ra>
// kernel: tpu_custom_call.1
= control target key start
LH: loop header
LB: loop body
LE: loop exit
PB: predicated region body
PF: predicated region fallthrough
CT: control target
= control target key end

     0   :  { %12 = vsyncpa [#allocation3], 0  ;;  %s2731_s0 = inlined_call_operand.vmem [shape: f32[2,8,96], index: 0, kind: input, shape index: {}]   ;;  %s2732_s1 = inlined_call_operand.vmem [shape: f32[4,96,24], index: 1, kind: input, shape index: {}]   ;;  %s2733_s2 = inlined_call_operand.vmem [shape: f32[4,1,24], index: 2, kind: input, shape index: {}]   ;;  %s2734_s3 = inlined_call_operand.vmem [shape: f32[4,8,32], index: 3, kind: input, shape index: {}]   ;;  %s2735_s4 = inlined_call_operand.vmem [shape: f32[1,32], index: 4, kind: input, shape index: {}]   ;;  %s2736_s5 = inlined_call_operand.hbm [shape: f32[2,8,32], index: 5, kind: output, shape index: {0}]   ;;  %s2737_s6 = inlined_call_operand.hbm [shape: f32[2,4,8,8], index: 6, kind: output, shape index: {1}]  }
   0x1   :  { %14 = vsyncpa [#allocation3 + $0x1], 0 }
   0x2   :  { %15 = vsyncpa [#allocation5], 0 }
   0x3   :  { %17 = vsyncpa [#allocation5 + $0x1], 0  ;;  %s2286_s21 = smov 0   ;;  %s2288_s22 = smov 0  }
   0x4   :  { %s2290_s23 = smov 0   ;;  %s2292_s24 = smov 0  }
   0x5 LB: > { %s2307_s25 = sadd.s32 4294967295, %s2240_s24   ;;  %s1723_s26 = sadd.s32 4294967294, %s2240_s24   ;;  %s2240_s24 = sphi %s2292_s24, %s2743_s24   ;;  %s2236_s23 = sphi %s2290_s23, %s2742_s23   ;;  %s2232_s22 = sphi %s2288_s22, %s2741_s22   ;;  %s2228_s21 = sphi %s2286_s21, %s2740_s21  }
   0x6   : > { %s2311_s27 = sadd.s32 1, %s2240_s24   ;;  %s140_s28 = sadd.s32 1, %s2236_s23 }
   0x7   : > { %s137_s29 = ssub.s32 %s2240_s24, %s2311_s27  ;;  %p150_p0 = scmp.ne.s32.totalorder %s2236_s23, %s2232_s22 }
   0x8   : > { %p138_p1 = scmp.eq.s32.totalorder %s137_s29, 0  ;;  %p151_p2 = scmp.eq.s32.totalorder %s2307_s25, 1 }
   0x9   : > { %p156_p3 = scmp.ne.s32.totalorder %s2232_s22, %s2228_s21  ;;  %p157_p4 = scmp.eq.s32.totalorder %s1723_s26, 1 }
   0xa   : > { %s2322_s30 = scalar_select %p138_p1, %s2236_s23, %s140_s28  }
   0xb   : > { %p2324_p5 = por %p151_p2, %p150_p0  ;;  %p2328_p6 = por %p157_p4, %p156_p3 }
   0xc   : > { %p1726_p7 = scmp.ge.s32.totalorder %s2240_s24, 1  ;;  %p220_p8 = scmp.lt.s32.totalorder %s2240_s24, 3 }
   0xe   : > { %p221_p9 = pnand %p1726_p7, %p220_p8 }
   0xf   : > { %v259_v0 = vld [vmem:[%s2732_s1] sm:$0xff] (!%p221_p9)  ;;  %v260_v1 = vld [vmem:[%s2732_s1 + $0x8] sm:$0xff] (!%p221_p9)  ;;  %v2242_v3 = vmov (!%p221_p9), 0.0|0.0   ;;  %v261_v6 = vld [vmem:[%s2732_s1 + $0x10] sm:$0xff] (!%p221_p9)  ;;  %vm2243_vm0 = vmmov (!%p221_p9), 0   ;;  %v2244_v11 = vmov (!%p221_p9), 0.0  }
  0x10   : > { %224 = sbr.rel (%p221_p9) target bundleno = 1372 (0x55c), region = 40  ;;  %v271_v2 = vld [vmem:[%s2732_s1 + $0x60] sm:$0xff] (!%p221_p9)  ;;  %2007 = vmatprep.subr.bf16.mxu0 (!%p221_p9), %v2242_v3  ;;  %v2008_v4 = vpack.c.bf16 (!%p221_p9), %v260_v1, %v259_v0  ;;  %2025 = vmatprep.subr.bf16.mxu1 (!%p221_p9), %v2242_v3  ;;  %v272_v5 = vld [vmem:[%s2732_s1 + $0x68] sm:$0xff] (!%p221_p9)  ;;  %v262_v7 = vld [vmem:[%s2732_s1 + $0x18] sm:$0xff] (!%p221_p9)  ;;  %p254_p10 = scmp.lt.s32.totalorder (!%p221_p9), %s2307_s25, 1  ;;  %vm335_vm1 = vcmask (!%p221_p9), 785408  }
  0x11   : > { %v2026_v8 = vpack.c.bf16 (!%p221_p9), %v272_v5, %v271_v2  ;;  %v273_v9 = vld [vmem:[%s2732_s1 + $0x70] sm:$0xff] (!%p221_p9)  ;;  %v274_v10 = vld [vmem:[%s2732_s1 + $0x78] sm:$0xff] (!%p221_p9)  ;;  %1863 = vmatprep.mubr.msk.f32.mxu0 (!%p221_p9), %vm2243_vm0, %v2244_v11  ;;  %1890 = vmatprep.mubr.msk.f32.mxu1 (!%p221_p9), %vm2243_vm0, %v2244_v11  ;;  %v2011_v12 = vpack.c.bf16 (!%p221_p9), %v262_v7, %v261_v6  ;;  %v263_v14 = vld [vmem:[%s2732_s1 + $0x20] sm:$0xff] (!%p221_p9)  ;;  %s2245_s10 = smov (!%p221_p9), 120   ;;  %vm622_vm2 = vcmask (!%p221_p9), 64512   ;;  %s2246_s14 = smov (!%p221_p9), 112  }
  0x12   : > { %2009 = vmatpush3.bf16.msra.mxu0 (!%p221_p9), %v2008_v4  ;;  %v2029_v13 = vpack.c.bf16 (!%p221_p9), %v274_v10, %v273_v9  ;;  %v264_v15 = vld [vmem:[%s2732_s1 + $0x28] sm:$0xff] (!%p221_p9)  ;;  %v275_v16 = vld [vmem:[%s2732_s1 + $0x80] sm:$0xff] (!%p221_p9)  ;;  %v265_v20 = vld [vmem:[%s2732_s1 + $0x30] sm:$0xff] (!%p221_p9)  ;;  %s2592_s15 = sand.u32 (!%p221_p9), 1, %s2232_s22   ;;  %s1762_s12 = sshll.u32 (!%p221_p9), %s2307_s25, 9 }
  0x13   : > { %2010 = vmatprep.subr.bf16.mxu0 (!%p221_p9), %v2242_v3  ;;  %2027 = vmatpush3.bf16.msra.mxu1 (!%p221_p9), %v2026_v8  ;;  %v276_v17 = vld [vmem:[%s2732_s1 + $0x88] sm:$0xff] (!%p221_p9)  ;;  %v2014_v18 = vpack.c.bf16 (!%p221_p9), %v264_v15, %v263_v14  ;;  %v266_v21 = vld [vmem:[%s2732_s1 + $0x38] sm:$0xff] (!%p221_p9)  ;;  %v277_v22 = vld [vmem:[%s2732_s1 + $0x90] sm:$0xff] (!%p221_p9)  ;;  %s1603_s18 = scalar_lea.sflag (!%p221_p9), [#allocation5], %s2592_s15  ;;  %s2247_s20 = smov (!%p221_p9), [#allocation4]  }
  0x14   : > { %2028 = vmatprep.subr.bf16.mxu1 (!%p221_p9), %v2242_v3  ;;  %v2032_v19 = vpack.c.bf16 (!%p221_p9), %v276_v17, %v275_v16  ;;  %v278_v23 = vld [vmem:[%s2732_s1 + $0x98] sm:$0xff] (!%p221_p9)  ;;  %v2017_v24 = vpack.c.bf16 (!%p221_p9), %v266_v21, %v265_v20  ;;  %v267_v26 = vld [vmem:[%s2732_s1 + $0x40] sm:$0xff] (!%p221_p9)  ;;  %v268_v27 = vld [vmem:[%s2732_s1 + $0x48] sm:$0xff] (!%p221_p9)  ;;  %s2150_s26 = sshll.u32 (!%p221_p9), %s2247_s20, 4  ;;  %s2151_s26 = int_to_ptr.vmem [resolvable:$false] %s2150_s26 }
  0x15   : > { %v2035_v25 = vpack.c.bf16 (!%p221_p9), %v278_v23, %v277_v22  ;;  %v279_v28 = vld [vmem:[%s2732_s1 + $0xa0] sm:$0xff] (!%p221_p9)  ;;  %v280_v29 = vld [vmem:[%s2732_s1 + $0xa8] sm:$0xff] (!%p221_p9)  ;;  %v2020_v30 = vpack.c.bf16 (!%p221_p9), %v268_v27, %v267_v26  ;;  %v269_v32 = vld [vmem:[%s2732_s1 + $0x50] sm:$0xff] (!%p221_p9) }
  0x16   : > { %2012 = vmatpush3.bf16.msra.mxu0 (!%p221_p9), %v2011_v12  ;;  %v2038_v31 = vpack.c.bf16 (!%p221_p9), %v280_v29, %v279_v28  ;;  %v270_v33 = vld [vmem:[%s2732_s1 + $0x58] sm:$0xff] (!%p221_p9)  ;;  %v281_v34 = vld [vmem:[%s2732_s1 + $0xb0] sm:$0xff] (!%p221_p9)  ;;  %v283_v38 = vld [vmem:[%s2732_s1 + $0xc0] sm:$0xff] (!%p221_p9) }
  0x17   : > { %2013 = vmatprep.subr.bf16.mxu0 %v2242_v3  ;;  %2030 = vmatpush3.bf16.msra.mxu1 %v2029_v13  ;;  %s255_s19 = scalar_select %p254_p10, %s2307_s25, 1  ;;  %v282_v35 = vld [vmem:[%s2732_s1 + $0xb8] sm:$0xff]  ;;  %v2023_v36 = vpack.c.bf16 %v270_v33, %v269_v32  ;;  %v284_v39 = vld [vmem:[%s2732_s1 + $0xc8] sm:$0xff]  ;;  %v295_v40 = vld [vmem:[%s2732_s1 + $0x120] sm:$0xff] }
  0x18   : > { %2031 = vmatprep.subr.bf16.mxu1 %v2242_v3  ;;  %v2041_v37 = vpack.c.bf16 %v282_v35, %v281_v34  ;;  %v296_v41 = vld [vmem:[%s2732_s1 + $0x128] sm:$0xff]  ;;  %v2044_v43 = vpack.c.bf16 %v284_v39, %v283_v38  ;;  %v285_v45 = vld [vmem:[%s2732_s1 + $0xd0] sm:$0xff]  ;;  %v286_v46 = vld [vmem:[%s2732_s1 + $0xd8] sm:$0xff] }
  0x19   : > { %s1729_s9 = sshll.u32 %s255_s19, 3  ;;  %v2062_v44 = vpack.c.bf16 %v296_v41, %v295_v40  ;;  %v297_v47 = vld [vmem:[%s2732_s1 + $0x130] sm:$0xff]  ;;  %v298_v48 = vld [vmem:[%s2732_s1 + $0x138] sm:$0xff]  ;;  %v2047_v49 = vpack.c.bf16 %v286_v46, %v285_v45  ;;  %v287_v51 = vld [vmem:[%s2732_s1 + $0xe0] sm:$0xff] }
  0x1a   : > { %2015 = vmatpush3.bf16.msra.mxu0 %v2014_v18  ;;  %s257_s16 = scalar_lea.vmem %s2731_s0, %s1729_s9  ;;  %v2065_v50 = vpack.c.bf16 %v298_v48, %v297_v47  ;;  %v288_v52 = vld [vmem:[%s2732_s1 + $0xe8] sm:$0xff]  ;;  %v299_v53 = vld [vmem:[%s2732_s1 + $0x140] sm:$0xff]  ;;  %v289_v57 = vld [vmem:[%s2732_s1 + $0xf0] sm:$0xff] }
  0x1b   : > { %2016 = vmatprep.subr.bf16.mxu0 %v2242_v3  ;;  %2033 = vmatpush3.bf16.msra.mxu1 %v2032_v19  ;;  %v2439_v42 = vld [vmem:[%s257_s16] sm:$0xff]  ;;  %v300_v54 = vld [vmem:[%s2732_s1 + $0x148] sm:$0xff]  ;;  %v2050_v55 = vpack.c.bf16 %v288_v52, %v287_v51  ;;  %v290_v58 = vld [vmem:[%s2732_s1 + $0xf8] sm:$0xff]  ;;  %s1728_s16 = sshll.u32 %s2592_s15, 5 }
  0x1c   : > { %2034 = vmatprep.subr.bf16.mxu1 %v2242_v3  ;;  %v2068_v56 = vpack.c.bf16 %v300_v54, %v299_v53  ;;  %v301_v59 = vld [vmem:[%s2732_s1 + $0x150] sm:$0xff]  ;;  %v302_v60 = vld [vmem:[%s2732_s1 + $0x158] sm:$0xff]  ;;  %v2053_v61 = vpack.c.bf16 %v290_v58, %v289_v57  ;;  %v291_v63 = vld [vmem:[%s2732_s1 + $0x100] sm:$0xff]  ;;  %s2596_s17 = scalar_lea.vmem [#allocation4], %s1728_s16  ;;  %s2649_s16 = scalar_lea.hbm %s2737_s6, %s1762_s12 }
  0x1d   : > { %v2071_v62 = vpack.c.bf16 %v302_v60, %v301_v59  ;;  %v292_v0 = vld [vmem:[%s2732_s1 + $0x108] sm:$0xff]  ;;  %v303_v1 = vld [vmem:[%s2732_s1 + $0x160] sm:$0xff]  ;;  %v293_v6 = vld [vmem:[%s2732_s1 + $0x110] sm:$0xff]  ;;  %s1629_s11 = sshll.u32 %s2596_s17, 4  ;;  %s2644_s11 = int_to_ptr.vmem [resolvable:$true] %s1629_s11 }
  0x1e   : > { %2018 = vmatpush3.bf16.msra.mxu0 %v2017_v24  ;;  %v304_v2 = vld [vmem:[%s2732_s1 + $0x168] sm:$0xff]  ;;  %v2056_v4 = vpack.c.bf16 %v292_v0, %v291_v63  ;;  %v294_v7 = vld [vmem:[%s2732_s1 + $0x118] sm:$0xff]  ;;  %v305_v8 = vld [vmem:[%s2732_s1 + $0x170] sm:$0xff]  ;;  %s2146_s19 = scalar_lea.vmem %s2644_s11, 512  ;;  %p2153_p0 = scmp.lt.s32.totalorder %s2644_s11, %s2151_s26 }
  0x1f   : > { %2019 = vmatprep.subr.bf16.mxu0 %v2242_v3  ;;  %2036 = vmatpush3.bf16.msra.mxu1 %v2035_v25  ;;  %v2074_v5 = vpack.c.bf16 %v304_v2, %v303_v1  ;;  %v306_v9 = vld [vmem:[%s2732_s1 + $0x178] sm:$0xff]  ;;  %v2059_v10 = vpack.c.bf16 %v294_v7, %v293_v6  ;;  %v1731_v14 = vld [vmem:[%s2733_s2 + $0x1] ss:$0 sm:$0xff]  ;;  %v1732_v20 = vld [vmem:[%s2733_s2 + $0x2] ss:$0 sm:$0xff]  ;;  %p2147_p11 = scmp.ne.s32.totalorder %s2644_s11, %s2146_s19 }
  0x20   : > { %2037 = vmatprep.subr.bf16.mxu1 %v2242_v3  ;;  %v2077_v12 = vpack.c.bf16 %v306_v9, %v305_v8  ;;  %v1733_v22 = vld [vmem:[%s2733_s2 + $0x3] ss:$0 sm:$0xff] }
  0x21   : > { %p2148_p12 = pnand %p2147_p11, %p2324_p5 }
  0x22   : > { %2021 = vmatpush3.bf16.msra.mxu0 %v2020_v30 }
  0x23   : > { %2022 = vmatprep.subr.bf16.mxu0 %v2242_v3  ;;  %2039 = vmatpush3.bf16.msra.mxu1 %v2038_v31  ;;  %p2149_p13 = pneg %p2148_p12 }
  0x24   : > { %2040 = vmatprep.subr.bf16.mxu1 %v2242_v3 }
  0x26   : > { %2024 = vmatpush3.bf16.msra.mxu0 %v2023_v36 }
  0x27   : > { %2042 = vmatpush3.bf16.msra.mxu1 %v2041_v37  ;;  %2043 = vmatprep.subr.bf16.mxu0 %v2242_v3 }
  0x28   : > { %2061 = vmatprep.subr.bf16.mxu1 %v2242_v3 }
  0x29   : > { %1864 = vmatmul.mubr.msk.f32.vlgmr.msra.gmra.mrb[0].mxu0 %vm335_vm1, %v2439_v42 }
  0x2a   : > { %2045 = vmatpush3.bf16.msra.mxu0 %v2044_v43  ;;  %1891 = vmatmul.mubr.msk.f32.vlgmr.msra.gmra.mrb[0].mxu1 %vm335_vm1, %v2439_v42 }
  0x2b   : > { %2046 = vmatprep.subr.bf16.mxu0 %v2242_v3  ;;  %2063 = vmatpush3.bf16.msra.mxu1 %v2062_v44 }
  0x2c   : > { %2064 = vmatprep.subr.bf16.mxu1 %v2242_v3  ;;  %1917 = vmatprep.mubr.msk.f32.mxu0 %vm2243_vm0, %v2244_v11 }
  0x2d   : > { %1944 = vmatprep.mubr.msk.f32.mxu1 %vm2243_vm0, %v2244_v11 }
  0x2e   : > { %2048 = vmatpush3.bf16.msra.mxu0 %v2047_v49 }
  0x2f   : > { %2049 = vmatprep.subr.bf16.mxu0 %v2242_v3  ;;  %2066 = vmatpush3.bf16.msra.mxu1 %v2065_v50 }
  0x30   : > { %2067 = vmatprep.subr.bf16.mxu1 %v2242_v3 }
  0x32   : > { %2051 = vmatpush3.bf16.msra.mxu0 %v2050_v55 }
  0x33   : > { %2052 = vmatprep.subr.bf16.mxu0 %v2242_v3  ;;  %2069 = vmatpush3.bf16.msra.mxu1 %v2068_v56 }
  0x34   : > { %2070 = vmatprep.subr.bf16.mxu1 %v2242_v3 }
  0x36   : > { %2054 = vmatpush3.bf16.msra.mxu0 %v2053_v61 }
  0x37   : > { %2055 = vmatprep.subr.bf16.mxu0 %v2242_v3  ;;  %2072 = vmatpush3.bf16.msra.mxu1 %v2071_v62 }
  0x38   : > { %2073 = vmatprep.subr.bf16.mxu1 %v2242_v3 }
  0x3a   : > { %2057 = vmatpush3.bf16.msra.mxu0 %v2056_v4 }
  0x3b   : > { %2058 = vmatprep.subr.bf16.mxu0 %v2242_v3  ;;  %2075 = vmatpush3.bf16.msra.mxu1 %v2074_v5 }
  0x3c   : > { %2076 = vmatprep.subr.bf16.mxu1 %v2242_v3  ;;  %v1730_v3 = vld [vmem:[%s2733_s2] ss:$0 sm:$0xff] }
  0x3e   : > { %2060 = vmatpush3.bf16.msra.mxu0 %v2059_v10 }
  0x3f   : > { %2078 = vmatpush3.bf16.msra.mxu1 %v2077_v12  ;;  %1947 = vmatprep.subr.mxu0 %v2244_v11 }
  0x40   : > { %1952 = vmatprep.subr.mxu1 %v2244_v11 }
  0x41   : > { %1918 = vmatmul.mubr.msk.f32.vlgmr.msra.gmra.mrb[2].mxu0 %vm335_vm1, %v2439_v42 }
  0x42   : > { %1945 = vmatmul.mubr.msk.f32.vlgmr.msra.gmra.mrb[2].mxu1 %vm335_vm1, %v2439_v42  ;;  %1949 = vmatprep.mubr.msk.f32.mxu0 %vm2243_vm0, %v2244_v11 }
  0x43   : > { %1954 = vmatprep.mubr.msk.f32.mxu1 %vm2243_vm0, %v2244_v11 }
  0xfc   : > { %v405_v13 = vpop.f32.mrb[0].mxu0 }
  0xfd   : > { %v406_v15 = vadd.f32 %v1730_v3, %v405_v13  ;;  %v1865_v16 = vpop.f32.mrb[1].mxu0  ;;  %v475_v17 = vpop.f32.mrb[0].mxu1 }
  0xfe   : > { %v1892_v18 = vpop.f32.mrb[1].mxu1  ;;  %v2537_v19 = vadd.f32 %v1731_v14, %v475_v17 }
  0xff   : > { %620 = vrot.lane.b32.xlu0 %v406_v15, %s2245_s10 }
 0x103   : > { %698 = vrot.lane.b32.xlu0 %v2537_v19, %s2245_s10 }
 0x114   : > { %v545_v21 = vpop.f32.mrb[2].mxu0 }
 0x115   : > { %v2546_v23 = vadd.f32 %v1732_v20, %v545_v21  ;;  %v1919_v24 = vpop.f32.mrb[3].mxu0  ;;  %v615_v25 = vpop.f32.mrb[2].mxu1  ;;  %v1284_v21 = vld [vmem:[%s2734_s3] sm:$0xff] }
 0x116   : > { %v1946_v26 = vpop.f32.mrb[3].mxu1  ;;  %v2548_v27 = vadd.f32 %v1733_v22, %v615_v25  ;;  %v1285_v22 = vld [vmem:[%s2734_s3 + $0x8] sm:$0xff] }
 0x117   : > { %775 = vrot.lane.b32.xlu1 %v2546_v23, %s2245_s10  ;;  %v1287_v26 = vld [vmem:[%s2734_s3 + $0x18] sm:$0xff] }
 0x11b   : > { %852 = vrot.lane.b32.xlu1 %v2548_v27, %s2245_s10 }
 0x171   : > { %v621_v28 = vpop.permute.xlu0 %620 }
 0x172   : > { %1948 = vmatpush3.xpose.msk.msra.mxu0 %vm622_vm2, %v621_v28 }
 0x173   : > { %1957 = vmatprep.subr.mxu0 %v2244_v11 }
 0x175   : > { %1950 = vmatmul.mubr.msk.f32.vlgmr.msra.gmra.mrb[4].mxu0 %vm622_vm2, %v406_v15  ;;  %v699_v29 = vpop.permute.xlu0 %698 }
 0x176   : > { %1953 = vmatpush3.xpose.msk.msra.mxu1 %vm622_vm2, %v699_v29  ;;  %1959 = vmatprep.mubr.msk.f32.mxu0 %vm2243_vm0, %v2244_v11 }
 0x177   : > { %1962 = vmatprep.subr.mxu1 %v2244_v11 }
 0x179   : > { %1955 = vmatmul.mubr.msk.f32.vlgmr.msra.gmra.mrb[4].mxu1 %vm622_vm2, %v2537_v19 }
 0x17a   : > { %1964 = vmatprep.mubr.msk.f32.mxu1 %vm2243_vm0, %v2244_v11 }
 0x189   : > { %v776_v30 = vpop.permute.xlu1 %775 }
 0x18a   : > { %1958 = vmatpush3.xpose.msk.msra.mxu0 %vm622_vm2, %v776_v30 }
 0x18b   : > { %1967 = vmatprep.subr.mxu0 %v2244_v11 }
 0x18d   : > { %1960 = vmatmul.mubr.msk.f32.vlgmr.msra.gmra.mrb[6].mxu0 %vm622_vm2, %v2546_v23  ;;  %v853_v31 = vpop.permute.xlu1 %852 }
 0x18e   : > { %1963 = vmatpush3.xpose.msk.msra.mxu1 %vm622_vm2, %v853_v31  ;;  %1969 = vmatprep.mubr.msk.f32.mxu0 %vm2243_vm0, %v2244_v11 }
 0x18f   : > { %1972 = vmatprep.subr.mxu1 %v2244_v11 }
 0x191   : > { %1965 = vmatmul.mubr.msk.f32.vlgmr.msra.gmra.mrb[6].mxu1 %vm622_vm2, %v2548_v27 }
 0x192   : > { %1974 = vmatprep.mubr.msk.f32.mxu1 %vm2243_vm0, %v2244_v11 }
 0x248   : > { %v693_v32 = vpop.f32.mrb[4].mxu0 }
 0x249   : > { %v928_v33 = vmul.f32 0.35355338, %v693_v32  ;;  %v1951_v34 = vpop.f32.mrb[5].mxu0 }
 0x24b   : > { %v932_v35 = vsel %vm622_vm2, %v928_v33, -inf }
 0x24c   : > { %v770_v36 = vpop.f32.mrb[4].mxu1  ;;  %933 = vmax.xlane.f32.xlu0 %v932_v35 }
 0x24d   : > { %v929_v37 = vmul.f32 0.35355338, %v770_v36  ;;  %v1956_v38 = vpop.f32.mrb[5].mxu1 }
 0x24f   : > { %v935_v39 = vsel %vm622_vm2, %v929_v37, -inf }
 0x250   : > { %936 = vmax.xlane.f32.xlu1 %v935_v39 }
 0x260   : > { %v847_v40 = vpop.f32.mrb[6].mxu0 }
 0x261   : > { %v930_v41 = vmul.f32 0.35355338, %v847_v40  ;;  %980 = vrot.lane.b32.xlu1 %v406_v15, %s2246_s14  ;;  %v1961_v42 = vpop.f32.mrb[7].mxu0 }
 0x263   : > { %v938_v43 = vsel %vm622_vm2, %v930_v41, -inf }
 0x264   : > { %v924_v44 = vpop.f32.mrb[6].mxu1  ;;  %939 = vmax.xlane.f32.xlu0 %v938_v43 }
 0x265   : > { %v931_v45 = vmul.f32 0.35355338, %v924_v44  ;;  %v1966_v46 = vpop.f32.mrb[7].mxu1 }
 0x267   : > { %v941_v47 = vsel %vm622_vm2, %v931_v45, -inf }
 0x268   : > { %942 = vmax.xlane.f32.xlu0 %v941_v47 }
 0x2d9   : > { %v934_v48 = vpop.xlane.xlu0 %933 }
 0x2da   : > { %v944_v49 = vsub.f32 %v928_v33, %v934_v48 }
 0x2dc   : > { %v948_v50 = vmul.f32 1.442695, %v944_v49 }
 0x2dd   : > { %v937_v51 = vpop.xlane.xlu1 %936 }
 0x2de   : > { %2130 = vpow2.f32 %v948_v50  ;;  %v945_v52 = vsub.f32 %v929_v37, %v937_v51 }
 0x2e0   : > { %v950_v53 = vmul.f32 1.442695, %v945_v52 }
 0x2e1   : > { %v981_v54 = vpop.permute.xlu1 %980 }
 0x2e2   : > { %2132 = vpow2.f32 %v950_v53  ;;  %1968 = vmatpush3.msra.mxu0 %v981_v54 }
 0x2e3   : > { %1977 = vmatprep.subr.mxu0 %v2244_v11 }
 0x2e8   : > { %v2131_v55 = vpop.eup %2130 }
 0x2e9   : > { %v956_v56 = vsel %vm622_vm2, %v2131_v55, 0.0 }
 0x2ea   : > { %957 = vadd.xlane.f32.xlu1 %v956_v56 }
 0x2ec   : > { %v2133_v57 = vpop.eup %2132 }
 0x2ed   : > { %v959_v58 = vsel %vm622_vm2, %v2133_v57, 0.0 }
 0x2ee   : > { %960 = vadd.xlane.f32.xlu0 %v959_v58 }
 0x2f1   : > { %v940_v59 = vpop.xlane.xlu0 %939 }
 0x2f2   : > { %v946_v60 = vsub.f32 %v930_v41, %v940_v59 }
 0x2f4   : > { %v952_v61 = vmul.f32 1.442695, %v946_v60 }
 0x2f5   : > { %v943_v62 = vpop.xlane.xlu0 %942 }
 0x2f6   : > { %2134 = vpow2.f32 %v952_v61  ;;  %v947_v63 = vsub.f32 %v931_v45, %v943_v62 }
 0x2f8   : > { %v954_v0 = vmul.f32 1.442695, %v947_v63 }
 0x2fa   : > { %2136 = vpow2.f32 %v954_v0 }
 0x300   : > { %v2135_v1 = vpop.eup %2134 }
 0x301   : > { %v962_v2 = vsel %vm622_vm2, %v2135_v1, 0.0 }
 0x302   : > { %963 = vadd.xlane.f32.xlu1 %v962_v2 }
 0x304   : > { %v2137_v4 = vpop.eup %2136 }
 0x305   : > { %v965_v5 = vsel %vm622_vm2, %v2137_v4, 0.0 }
 0x306   : > { %966 = vadd.xlane.f32.xlu0 %v965_v5 }
 0x313   : > { %1132 = vrot.lane.b32.xlu1 %v2546_v23, %s2246_s14  ;;  %v1286_v23 = vld [vmem:[%s2734_s3 + $0x10] sm:$0xff] }
 0x317   : > { %1208 = vrot.lane.b32.xlu1 %v2548_v27, %s2246_s14 }
 0x31c   : > { %1056 = vrot.lane.b32.xlu0 %v2537_v19, %s2246_s14 }
 0x377   : > { %v958_v6 = vpop.xlane.xlu1 %957 }
 0x378   : > { %2138 = vrcp.f32 %v958_v6 }
 0x37b   : > { %v961_v7 = vpop.xlane.xlu0 %960 }
 0x37c   : > { %2140 = vrcp.f32 %v961_v7 }
 0x382   : > { %v2139_v8 = vpop.eup %2138 }
 0x383   : > { %v969_v9 = vmul.f32 %v2139_v8, %v2131_v55 }
 0x385   : > { %1970 = vmatmul.mubr.msk.f32.vlgmr.msra.gmra.mrb[8].mxu0 %vm622_vm2, %v969_v9  ;;  %976 = vst.msk [vmem:[%s2596_s17] sm:$0xff] %vm622_vm2, %v969_v9 }
 0x386   : > { %v2141_v10 = vpop.eup %2140  ;;  %1979 = vmatprep.mubr.msk.f32.mxu0 %vm2243_vm0, %v2244_v11 }
 0x387   : > { %v971_v12 = vmul.f32 %v2141_v10, %v2133_v57 }
 0x389   : > { %977 = vst.msk [vmem:[%s2596_s17 + $0x8] sm:$0xff] %vm622_vm2, %v971_v12 }
 0x38f   : > { %v964_v3 = vpop.xlane.xlu1 %963 }
 0x390   : > { %2142 = vrcp.f32 %v964_v3 }
 0x393   : > { %v1133_v13 = vpop.permute.xlu1 %1132  ;;  %v967_v14 = vpop.xlane.xlu0 %966 }
 0x394   : > { %2144 = vrcp.f32 %v967_v14  ;;  %1978 = vmatpush3.msra.mxu0 %v1133_v13 }
 0x395   : > { %1987 = vmatprep.subr.mxu0 %v2244_v11 }
 0x397   : > { %v1057_v15 = vpop.permute.xlu0 %1056  ;;  %v1209_v16 = vpop.permute.xlu1 %1208 }
 0x398   : > { %1973 = vmatpush3.msra.mxu1 %v1057_v15 }
 0x399   : > { %1975 = vmatmul.mubr.msk.f32.vlgmr.msra.gmra.mrb[8].mxu1 %vm622_vm2, %v971_v12  ;;  %1982 = vmatprep.subr.mxu1 %v2244_v11 }
 0x39a   : > { %v2143_v17 = vpop.eup %2142  ;;  %1983 = vmatpush3.msra.mxu1 %v1209_v16  ;;  %1984 = vmatprep.mubr.msk.f32.mxu1 %vm2243_vm0, %v2244_v11 }
 0x39b   : > { %v973_v18 = vmul.f32 %v2143_v17, %v2135_v1  ;;  %1992 = vmatprep.subr.mxu1 %v2244_v11 }
 0x39d   : > { %1980 = vmatmul.mubr.msk.f32.vlgmr.msra.gmra.mrb[10].mxu0 %vm622_vm2, %v973_v18  ;;  %978 = vst.msk [vmem:[%s2596_s17 + $0x10] sm:$0xff] %vm622_vm2, %v973_v18 }
 0x39e   : > { %v2145_v19 = vpop.eup %2144  ;;  %1989 = vmatprep.mubr.msk.f32.mxu0 %vm2243_vm0, %v2244_v11  ;;  %1988 = vmatpush3.msra.mxu0 %v1284_v21 }
 0x39f   : > { %v975_v20 = vmul.f32 %v2145_v19, %v2137_v4  ;;  %1997 = vmatprep.subr.mxu0 %v2244_v11 }
 0x3a1   : > { %1985 = vmatmul.mubr.msk.f32.vlgmr.msra.gmra.mrb[10].mxu1 %vm622_vm2, %v975_v20  ;;  %979 = vst.msk [vmem:[%s2596_s17 + $0x18] sm:$0xff] %vm622_vm2, %v975_v20  ;;  %s2152_s17 = scalar_lea.vmem %s2151_s26, 1024 }
 0x3a2   : > { %1994 = vmatprep.mubr.msk.f32.mxu1 %vm2243_vm0, %v2244_v11  ;;  %1993 = vmatpush3.msra.mxu1 %v1285_v22  ;;  %p2154_p1 = scmp.lt.s32.totalorder %s2152_s17, %s2146_s19 }
 0x3a3   : > { %2002 = vmatprep.subr.mxu1 %v2244_v11 }
 0x3a4   : > { %p2155_p2 = por %p2154_p1, %p2153_p0 }
 0x3a6   : > { %p2156_p3 = pnand %p2155_p2, %p2149_p13 }
 0x458   : > { %v1052_v24 = vpop.f32.mrb[8].mxu0 }
 0x459   : > { %v1971_v25 = vpop.f32.mrb[9].mxu0  ;;  %1990 = vmatmul.mubr.msk.f32.vlgmr.msra.gmra.mrb[12].mxu0 %vm622_vm2, %v1052_v24 }
 0x45a   : > { %1998 = vmatpush3.msra.mxu0 %v1286_v23  ;;  %1999 = vmatprep.mubr.msk.f32.mxu0 %vm2243_vm0, %v2244_v11 }
 0x46c   : > { %v1128_v27 = vpop.f32.mrb[8].mxu1 }
 0x46d   : > { %v1976_v28 = vpop.f32.mrb[9].mxu1  ;;  %1995 = vmatmul.mubr.msk.f32.vlgmr.msra.gmra.mrb[12].mxu1 %vm622_vm2, %v1128_v27 }
 0x46e   : > { %2003 = vmatpush3.msra.mxu1 %v1287_v26  ;;  %2004 = vmatprep.mubr.msk.f32.mxu1 %vm2243_vm0, %v2244_v11 }
 0x470   : > { %v1204_v29 = vpop.f32.mrb[10].mxu0 }
 0x471   : > { %v1981_v30 = vpop.f32.mrb[11].mxu0  ;;  %2000 = vmatmul.mubr.msk.f32.vlgmr.msra.gmra.mrb[14].mxu0 %vm622_vm2, %v1204_v29 }
 0x474   : > { %v1280_v31 = vpop.f32.mrb[10].mxu1 }
 0x475   : > { %v1986_v32 = vpop.f32.mrb[11].mxu1  ;;  %2005 = vmatmul.mubr.msk.f32.vlgmr.msra.gmra.mrb[14].mxu1 %vm622_vm2, %v1280_v31 }
 0x476   : > { %2159 = shalt.err (!%p2156_p3)
}
 0x477   : > { %s2160_s28 = scalar_lea.hbm %s2649_s16, 512  ;;  %s2164_s9 = scalar_lea.hbm %s2737_s6, 1024 }
 0x478   : > { %p2161_p4 = scmp.ne.s32.totalorder %s2649_s16, %s2160_s28  ;;  %p2165_p9 = scmp.lt.u32.totalorder %s2649_s16, %s2737_s6 }
 0x479   : > { %p2166_p10 = scmp.lt.u32.totalorder %s2164_s9, %s2160_s28  ;;  %p2168_p12 = scmp.lt.u32.totalorder %s2160_s28, %s2649_s16 }
 0x47a   : > { %p2162_p7 = pnand %p2161_p4, %p2324_p5 }
 0x47b   : > { %p2167_p11 = por %p2166_p10, %p2165_p9 }
 0x47c   : > { %p2163_p8 = pneg %p2162_p7 }
 0x47d   : > { %p2169_p13 = por %p2168_p12, %p2167_p11 }
 0x47f   : > { %p2170_p0 = pnand %p2169_p13, %p2163_p8 }
 0x481   : > { %2173 = shalt.err (!%p2170_p0)
}
 0x482   : > { %s2248_s14 = smov 128   ;;  %s2249_s19 = smov 8   ;;  %vm1580_vm3 = vcmask 261120   ;;  %v1754_v45 = vld [vmem:[%s2735_s4] ss:$0 sm:$0xff] }
 0x483   : > { %2080 = dma.vmem_to_hbm [thread:$0]  (%p2324_p5), %s2644_s11, 512, %s2649_s16, %s1603_s18, %s2248_s14, %s2248_s14, %s2249_s19  }
 0x484   : > { %s1727_s20 = sshll.u32 %s2592_s15, 3  ;;  %s1757_s18 = sshll.u32 %s2307_s25, 7 }
 0x485   : > { %s246_s26 = scalar_lea.vmem [#allocation2], %s1727_s20  ;;  %s2687_s10 = scalar_lea.hbm %s2736_s5, %s1757_s18 }
 0x486   : > { %s1616_s17 = sshll.u32 %s246_s26, 4  ;;  %s1598_s9 = scalar_lea.sflag [#allocation3], %s2592_s15  ;;  %s2689_s17 = int_to_ptr.vmem [resolvable:$true] %s1616_s17 }
 0x487   : > { %s2174_s12 = scalar_lea.vmem %s2689_s17, 128  ;;  %s2250_s25 = smov [#allocation2]  }
 0x488   : > { %p2175_p1 = scmp.ne.s32.totalorder %s2689_s17, %s2174_s12  ;;  %s2178_s13 = sshll.u32 %s2250_s25, 4  ;;  %s2179_s13 = int_to_ptr.vmem [resolvable:$false] %s2178_s13 }
 0x489   : > { %s2180_s14 = scalar_lea.vmem %s2179_s13, 256  ;;  %p2181_p4 = scmp.lt.s32.totalorder %s2689_s17, %s2179_s13 }
 0x48a   : > { %p2176_p2 = pnand %p2175_p1, %p2324_p5  ;;  %p2182_p7 = scmp.lt.s32.totalorder %s2180_s14, %s2174_s12 }
 0x48c   : > { %p2177_p3 = pneg %p2176_p2  ;;  %p2183_p8 = por %p2182_p7, %p2181_p4 }
 0x48e   : > { %p2184_p9 = pnand %p2183_p8, %p2177_p3 }
 0x52c   : > { %v1357_v11 = vpop.f32.mrb[12].mxu0 }
 0x52d   : > { %v1991_v33 = vpop.f32.mrb[13].mxu0  ;;  %v1581_v35 = vsel %vm1580_vm3, %v1357_v11, 0.0 }
 0x540   : > { %v1430_v34 = vpop.f32.mrb[12].mxu1 }
 0x541   : > { %v1582_v36 = vsel %vm1580_vm3, %v1430_v34, 0.0  ;;  %v1996_v37 = vpop.f32.mrb[13].mxu1 }
 0x542   : > { %v1583_v38 = vadd.f32 %v1582_v36, %v1581_v35 }
 0x544   : > { %v1503_v39 = vpop.f32.mrb[14].mxu0 }
 0x545   : > { %v1584_v40 = vsel %vm1580_vm3, %v1503_v39, 0.0  ;;  %v2001_v41 = vpop.f32.mrb[15].mxu0 }
 0x546   : > { %v1585_v42 = vadd.f32 %v1584_v40, %v1583_v38 }
 0x548   : > { %v1576_v43 = vpop.f32.mrb[14].mxu1 }
 0x549   : > { %v1586_v44 = vsel %vm1580_vm3, %v1576_v43, 0.0  ;;  %v2006_v46 = vpop.f32.mrb[15].mxu1 }
 0x54a   : > { %v1587_v47 = vadd.f32 %v1586_v44, %v1585_v42 }
 0x54c   : > { %v1595_v48 = vadd.f32 %v1754_v45, %v1587_v47 }
 0x54e   : > { %1596 = vst.msk [vmem:[%s246_s26] sm:$0xff] %vm1580_vm3, %v1595_v48 }
 0x54f   : > { %2187 = shalt.err (!%p2184_p9)
}
 0x550   : > { %s2188_s15 = scalar_lea.hbm %s2687_s10, 128  ;;  %s2192_s11 = scalar_lea.hbm %s2736_s5, 256 }
 0x551   : > { %p2189_p10 = scmp.ne.s32.totalorder %s2687_s10, %s2188_s15  ;;  %p2193_p13 = scmp.lt.u32.totalorder %s2687_s10, %s2736_s5 }
 0x552   : > { %p2194_p0 = scmp.lt.u32.totalorder %s2192_s11, %s2188_s15  ;;  %p2196_p2 = scmp.lt.u32.totalorder %s2188_s15, %s2687_s10 }
 0x553   : > { %p2190_p11 = pnand %p2189_p10, %p2324_p5 }
 0x554   : > { %p2195_p1 = por %p2194_p0, %p2193_p13 }
 0x555   : > { %p2191_p12 = pneg %p2190_p11 }
 0x556   : > { %p2197_p3 = por %p2196_p2, %p2195_p1 }
 0x558   : > { %p2198_p4 = pnand %p2197_p3, %p2191_p12 }
 0x55a   : > { %2201 = shalt.err (!%p2198_p4)
}
 0x55b   : > { %2079 = dma.vmem_to_hbm [thread:$0]  (%p2324_p5), %s2689_s17, 128, %s2687_s10, %s1598_s9  }
 0x55c PF: > { %p2090_p7 = scmp.ge.s32.totalorder %s2240_s24, 2  ;;  %s1644_s26 = sand.u32 1, %s2228_s21  }
 0x55d   : > { %s1645_s28 = scalar_lea.sflag [#allocation3], %s1644_s26 }
 0x55e   : > { %p2084_p8 = pnand %p2090_p7, %p2328_p6 }
 0x560   : > { %2219 = dma.done.wait (!%p2084_p8), %s1645_s28, 128  }
 0x561   : > { %2221 = vsyncadd (!%p2084_p8), %s1645_s28, 4294967168  ;;  %s1654_s29 = scalar_lea.sflag [#allocation5], %s1644_s26 }
 0x562   : > { %2223 = dma.done.wait (!%p2084_p8), %s1654_s29, 512  }
 0x563   : > { %2225 = vsyncadd (!%p2084_p8), %s1654_s29, 4294966784  ;;  %p20_p5 = scmp.ge.s32.totalorder %s2311_s27, 4   ;;  %s2740_s21 = smov %s2232_s22 }
 0x564   : > { %s2741_s22 = smov %s2236_s23  ;;  %s2742_s23 = smov %s2322_s30 }
 0x565   : > { %s2743_s24 = smov %s2311_s27  ;;  %22 = sbr.rel (!%p20_p5) target bundleno = 5 (0x5), region = 92 }
 0x56c   :  { %1659 = vsyncpa [#allocation3], 1 }
 0x56d   :  { %1661 = vsyncpa [#allocation3 + $0x1], 1 }
 0x56e   :  { %1662 = vsyncpa [#allocation5], 1 }
 0x56f   :  { %1664 = vsyncpa [#allocation5 + $0x1], 1 }

</bundles_post_ra>
